<compile_context>
chip_gen: v7x
topology: tpu7x:2x2x1
jax: 0.10.0
libtpu: 0.0.40
codegen_flags: <defaults>
</compile_context>

<pallas_src>
import jax
import jax.numpy as jnp
from jax.experimental import pallas as pl
from jax.experimental.pallas import tpu as pltpu

# --- config mirroring main_v4.py (args.depth = 6), kept small & static ---
NET_DEPTH = 6                      # args.depth
NET_ARCH = [8] * 27                # net_arch
IN_DIM = 2
HID = NET_ARCH[0]                  # 8
OUT_DIM = 2
MAX_BATCH_TILE = 512               # lanes per grid step (batch lives on lanes)


def simple_net_kernel(x_ref, w0_ref, b0_ref, wh_ref, bh_ref, wl_ref, bl_ref, o_ref):
    """One batch tile of the whole network.

    Batch lives on the lane (last) axis; features on sublanes.
      x_ref : (IN_DIM, tile)
      w0_ref: (HID, IN_DIM)              b0_ref: (HID, 1)
      wh_ref: (NET_DEPTH-2, HID, HID)    bh_ref: (NET_DEPTH-2, HID, 1)
      wl_ref: (OUT_DIM, HID)             bl_ref: (OUT_DIM, 1)
      o_ref : (OUT_DIM, tile)
    """
    # layer 0 + ReLU
    h = jnp.maximum(
        jnp.dot(w0_ref[...], x_ref[...], preferred_element_type=jnp.float32)
        + b0_ref[...],
        0.0,
    )
    # hidden layers + ReLU (short fixed trip count -> static unroll, static slices)
    for i in range(NET_DEPTH - 2):
        h = jnp.maximum(
            jnp.dot(wh_ref[i], h, preferred_element_type=jnp.float32) + bh_ref[i],
            0.0,
        )
    # final layer + ReLU (forward() relus the last layer too)
    o_ref[...] = jnp.maximum(
        jnp.dot(wl_ref[...], h, preferred_element_type=jnp.float32) + bl_ref[...],
        0.0,
    )


def simple_net_forward(x, params):
    """x: (B, IN_DIM) float32 -> (B, OUT_DIM) float32."""
    w0, b0, wh, bh, wl, bl = params
    b = x.shape[0]

    # Adaptive batch tile: single grid step for small batches, 512-lane tiles
    # (still trivially inside VMEM) for large ones.
    b128 = ((b + 127) // 128) * 128
    tile = min(MAX_BATCH_TILE, b128)
    b_pad = ((b + tile - 1) // tile) * tile
    grid = (b_pad // tile,)

    # Batch-in-lanes layout, zero-padded to a multiple of `tile` lanes.
    xt = jnp.zeros((IN_DIM, b_pad), jnp.float32).at[:, :b].set(x.T)

    out_t = pl.pallas_call(
        simple_net_kernel,
        out_shape=jax.ShapeDtypeStruct((OUT_DIM, b_pad), jnp.float32),
        grid=grid,
        in_specs=[
            pl.BlockSpec((IN_DIM, tile), lambda i: (0, i)),                # x (tiled on lanes)
            pl.BlockSpec((HID, IN_DIM), lambda i: (0, 0)),                 # w0 (resident)
            pl.BlockSpec((HID, 1), lambda i: (0, 0)),                      # b0
            pl.BlockSpec((NET_DEPTH - 2, HID, HID), lambda i: (0, 0, 0)),  # wh
            pl.BlockSpec((NET_DEPTH - 2, HID, 1), lambda i: (0, 0, 0)),    # bh
            pl.BlockSpec((OUT_DIM, HID), lambda i: (0, 0)),                # wl
            pl.BlockSpec((OUT_DIM, 1), lambda i: (0, 0)),                  # bl
        ],
        out_specs=pl.BlockSpec((OUT_DIM, tile), lambda i: (0, i)),
        compiler_params=pltpu.CompilerParams(
            dimension_semantics=("parallel",)),
    )(xt, w0, b0, wh, bh, wl, bl)

    # drop the zero-padded lanes and return batch-major
    return out_t[:, :b].T


def init_params(key):
    """PyTorch-Linear-style uniform(-1/sqrt(fan_in), 1/sqrt(fan_in)); weights are (out, in)."""
    ks = jax.random.split(key, 6)

    def u(k, shape, fan_in):
        bound = 1.0 / jnp.sqrt(jnp.float32(fan_in))
        return jax.random.uniform(k, shape, jnp.float32, -bound, bound)

    w0 = u(ks[0], (HID, IN_DIM), IN_DIM)
    b0 = u(ks[1], (HID, 1), IN_DIM)
    wh = u(ks[2], (NET_DEPTH - 2, HID, HID), HID)
    bh = u(ks[3], (NET_DEPTH - 2, HID, 1), HID)
    wl = u(ks[4], (OUT_DIM, HID), HID)
    bl = u(ks[5], (OUT_DIM, 1), HID)
    return w0, b0, wh, bh, wl, bl


def reference_forward(x, params):
    """Pure-JAX reference replicating the PyTorch forward exactly (batch-major)."""
    w0, b0, wh, bh, wl, bl = params
    h = jnp.maximum(x @ w0.T + b0[:, 0], 0.0)
    for i in range(NET_DEPTH - 2):
        h = jnp.maximum(h @ wh[i].T + bh[i, :, 0], 0.0)
    return jnp.maximum(h @ wl.T + bl[:, 0], 0.0)


if __name__ == "__main__":
    key = jax.random.PRNGKey(0)
    k_x, k_p = jax.random.split(key)
    params = init_params(k_p)

    # batch=200: pads to 256, single grid step (fast path for small batches).
    # batch=1300: pads to 1536, three 512-lane grid steps (exercises tiling).
    for batch in (200, 1300):
        x = jax.random.normal(jax.random.fold_in(k_x, batch), (batch, IN_DIM),
                              jnp.float32)
        out = jax.block_until_ready(simple_net_forward(x, params))
        ref = reference_forward(x, params)
        assert out.shape == (batch, OUT_DIM)
        assert jnp.allclose(out, ref, atol=1e-5, rtol=1e-5)

    print("KERNEL_OK")
</pallas_src>

<mosaic_0001>
module attributes {stable_mosaic.version = 11 : i64} {
  func.func @simple_net_kernel(%arg0: i32, %arg1: memref<2x256xf32, #tpu.memory_space<vmem>>, %arg2: memref<8x2xf32, #tpu.memory_space<vmem>>, %arg3: memref<8x1xf32, #tpu.memory_space<vmem>>, %arg4: memref<4x8x8xf32, #tpu.memory_space<vmem>>, %arg5: memref<4x8x1xf32, #tpu.memory_space<vmem>>, %arg6: memref<2x8xf32, #tpu.memory_space<vmem>>, %arg7: memref<2x1xf32, #tpu.memory_space<vmem>>, %arg8: memref<2x256xf32, #tpu.memory_space<vmem>>) attributes {dimension_semantics = [#tpu.dimension_semantics<parallel>], iteration_bounds = array<i64: 1>, scalar_prefetch = 0 : i64, scratch_operands = 0 : i64, tpu.core_type = #tpu.core_type<tc>, window_params = [{transform_indices = @transform_0, window_bounds = array<i64: 2, 256>}, {pipeline_mode = #tpu.pipeline_mode<synchronous>, transform_indices = @transform_1, window_bounds = array<i64: 8, 2>}, {pipeline_mode = #tpu.pipeline_mode<synchronous>, transform_indices = @transform_2, window_bounds = array<i64: 8, 1>}, {pipeline_mode = #tpu.pipeline_mode<synchronous>, transform_indices = @transform_3, window_bounds = array<i64: 4, 8, 8>}, {pipeline_mode = #tpu.pipeline_mode<synchronous>, transform_indices = @transform_4, window_bounds = array<i64: 4, 8, 1>}, {pipeline_mode = #tpu.pipeline_mode<synchronous>, transform_indices = @transform_5, window_bounds = array<i64: 2, 8>}, {pipeline_mode = #tpu.pipeline_mode<synchronous>, transform_indices = @transform_6, window_bounds = array<i64: 2, 1>}, {transform_indices = @transform_7, window_bounds = array<i64: 2, 256>}]} {
    %c0 = arith.constant 0 : index
    %c0_0 = arith.constant 0 : index
    %0 = vector.load %arg2[%c0, %c0_0] : memref<8x2xf32, #tpu.memory_space<vmem>>, vector<8x2xf32>
    %c0_1 = arith.constant 0 : index
    %c0_2 = arith.constant 0 : index
    %1 = vector.load %arg1[%c0_1, %c0_2] : memref<2x256xf32, #tpu.memory_space<vmem>>, vector<2x256xf32>
    %cst = arith.constant dense<0.000000e+00> : vector<8x256xf32>
    %2 = tpu.matmul %0, %1, %cst {dimension_numbers = #tpu.dot_dimension_numbers<[1], [0], [0], [1], [0, 0, 1, 1], [], []>} : vector<8x2xf32>, vector<2x256xf32>, vector<8x256xf32> -> vector<8x256xf32>
    %c0_3 = arith.constant 0 : index
    %c0_4 = arith.constant 0 : index
    %3 = vector.load %arg3[%c0_3, %c0_4] : memref<8x1xf32, #tpu.memory_space<vmem>>, vector<8x1xf32>
    %4 = vector.broadcast %3 : vector<8x1xf32> to vector<8x256xf32>
    %5 = arith.addf %2, %4 : vector<8x256xf32>
    %cst_5 = arith.constant 0.000000e+00 : f32
    %6 = vector.broadcast %cst_5 : f32 to vector<8x256xf32>
    %7 = arith.maximumf %5, %6 : vector<8x256xf32>
    %c0_6 = arith.constant 0 : index
    %c0_7 = arith.constant 0 : index
    %c0_8 = arith.constant 0 : index
    %8 = vector.load %arg4[%c0_6, %c0_7, %c0_8] : memref<4x8x8xf32, #tpu.memory_space<vmem>>, vector<1x8x8xf32>
    %9 = vector.shape_cast %8 : vector<1x8x8xf32> to vector<8x8xf32>
    %cst_9 = arith.constant dense<0.000000e+00> : vector<8x256xf32>
    %10 = tpu.matmul %9, %7, %cst_9 {dimension_numbers = #tpu.dot_dimension_numbers<[1], [0], [0], [1], [0, 0, 1, 1], [], []>} : vector<8x8xf32>, vector<8x256xf32>, vector<8x256xf32> -> vector<8x256xf32>
    %c0_10 = arith.constant 0 : index
    %c0_11 = arith.constant 0 : index
    %c0_12 = arith.constant 0 : index
    %11 = vector.load %arg5[%c0_10, %c0_11, %c0_12] : memref<4x8x1xf32, #tpu.memory_space<vmem>>, vector<1x8x1xf32>
    %12 = vector.shape_cast %11 : vector<1x8x1xf32> to vector<8x1xf32>
    %13 = vector.broadcast %12 : vector<8x1xf32> to vector<8x256xf32>
    %14 = arith.addf %10, %13 : vector<8x256xf32>
    %cst_13 = arith.constant 0.000000e+00 : f32
    %15 = vector.broadcast %cst_13 : f32 to vector<8x256xf32>
    %16 = arith.maximumf %14, %15 : vector<8x256xf32>
    %c1 = arith.constant 1 : index
    %c0_14 = arith.constant 0 : index
    %c0_15 = arith.constant 0 : index
    %17 = vector.load %arg4[%c1, %c0_14, %c0_15] : memref<4x8x8xf32, #tpu.memory_space<vmem>>, vector<1x8x8xf32>
    %18 = vector.shape_cast %17 : vector<1x8x8xf32> to vector<8x8xf32>
    %cst_16 = arith.constant dense<0.000000e+00> : vector<8x256xf32>
    %19 = tpu.matmul %18, %16, %cst_16 {dimension_numbers = #tpu.dot_dimension_numbers<[1], [0], [0], [1], [0, 0, 1, 1], [], []>} : vector<8x8xf32>, vector<8x256xf32>, vector<8x256xf32> -> vector<8x256xf32>
    %c1_17 = arith.constant 1 : index
    %c0_18 = arith.constant 0 : index
    %c0_19 = arith.constant 0 : index
    %20 = vector.load %arg5[%c1_17, %c0_18, %c0_19] : memref<4x8x1xf32, #tpu.memory_space<vmem>>, vector<1x8x1xf32>
    %21 = vector.shape_cast %20 : vector<1x8x1xf32> to vector<8x1xf32>
    %22 = vector.broadcast %21 : vector<8x1xf32> to vector<8x256xf32>
    %23 = arith.addf %19, %22 : vector<8x256xf32>
    %cst_20 = arith.constant 0.000000e+00 : f32
    %24 = vector.broadcast %cst_20 : f32 to vector<8x256xf32>
    %25 = arith.maximumf %23, %24 : vector<8x256xf32>
    %c2 = arith.constant 2 : index
    %c0_21 = arith.constant 0 : index
    %c0_22 = arith.constant 0 : index
    %26 = vector.load %arg4[%c2, %c0_21, %c0_22] : memref<4x8x8xf32, #tpu.memory_space<vmem>>, vector<1x8x8xf32>
    %27 = vector.shape_cast %26 : vector<1x8x8xf32> to vector<8x8xf32>
    %cst_23 = arith.constant dense<0.000000e+00> : vector<8x256xf32>
    %28 = tpu.matmul %27, %25, %cst_23 {dimension_numbers = #tpu.dot_dimension_numbers<[1], [0], [0], [1], [0, 0, 1, 1], [], []>} : vector<8x8xf32>, vector<8x256xf32>, vector<8x256xf32> -> vector<8x256xf32>
    %c2_24 = arith.constant 2 : index
    %c0_25 = arith.constant 0 : index
    %c0_26 = arith.constant 0 : index
    %29 = vector.load %arg5[%c2_24, %c0_25, %c0_26] : memref<4x8x1xf32, #tpu.memory_space<vmem>>, vector<1x8x1xf32>
    %30 = vector.shape_cast %29 : vector<1x8x1xf32> to vector<8x1xf32>
    %31 = vector.broadcast %30 : vector<8x1xf32> to vector<8x256xf32>
    %32 = arith.addf %28, %31 : vector<8x256xf32>
    %cst_27 = arith.constant 0.000000e+00 : f32
    %33 = vector.broadcast %cst_27 : f32 to vector<8x256xf32>
    %34 = arith.maximumf %32, %33 : vector<8x256xf32>
    %c3 = arith.constant 3 : index
    %c0_28 = arith.constant 0 : index
    %c0_29 = arith.constant 0 : index
    %35 = vector.load %arg4[%c3, %c0_28, %c0_29] : memref<4x8x8xf32, #tpu.memory_space<vmem>>, vector<1x8x8xf32>
    %36 = vector.shape_cast %35 : vector<1x8x8xf32> to vector<8x8xf32>
    %cst_30 = arith.constant dense<0.000000e+00> : vector<8x256xf32>
    %37 = tpu.matmul %36, %34, %cst_30 {dimension_numbers = #tpu.dot_dimension_numbers<[1], [0], [0], [1], [0, 0, 1, 1], [], []>} : vector<8x8xf32>, vector<8x256xf32>, vector<8x256xf32> -> vector<8x256xf32>
    %c3_31 = arith.constant 3 : index
    %c0_32 = arith.constant 0 : index
    %c0_33 = arith.constant 0 : index
    %38 = vector.load %arg5[%c3_31, %c0_32, %c0_33] : memref<4x8x1xf32, #tpu.memory_space<vmem>>, vector<1x8x1xf32>
    %39 = vector.shape_cast %38 : vector<1x8x1xf32> to vector<8x1xf32>
    %40 = vector.broadcast %39 : vector<8x1xf32> to vector<8x256xf32>
    %41 = arith.addf %37, %40 : vector<8x256xf32>
    %cst_34 = arith.constant 0.000000e+00 : f32
    %42 = vector.broadcast %cst_34 : f32 to vector<8x256xf32>
    %43 = arith.maximumf %41, %42 : vector<8x256xf32>
    %c0_35 = arith.constant 0 : index
    %c0_36 = arith.constant 0 : index
    %44 = vector.load %arg6[%c0_35, %c0_36] : memref<2x8xf32, #tpu.memory_space<vmem>>, vector<2x8xf32>
    %cst_37 = arith.constant dense<0.000000e+00> : vector<2x256xf32>
    %45 = tpu.matmul %44, %43, %cst_37 {dimension_numbers = #tpu.dot_dimension_numbers<[1], [0], [0], [1], [0, 0, 1, 1], [], []>} : vector<2x8xf32>, vector<8x256xf32>, vector<2x256xf32> -> vector<2x256xf32>
    %c0_38 = arith.constant 0 : index
    %c0_39 = arith.constant 0 : index
    %46 = vector.load %arg7[%c0_38, %c0_39] : memref<2x1xf32, #tpu.memory_space<vmem>>, vector<2x1xf32>
    %47 = vector.broadcast %46 : vector<2x1xf32> to vector<2x256xf32>
    %48 = arith.addf %45, %47 : vector<2x256xf32>
    %cst_40 = arith.constant 0.000000e+00 : f32
    %49 = vector.broadcast %cst_40 : f32 to vector<2x256xf32>
    %50 = arith.maximumf %48, %49 : vector<2x256xf32>
    %c0_41 = arith.constant 0 : index
    %c0_42 = arith.constant 0 : index
    %51 = vector.load %arg8[%c0_41, %c0_42] : memref<2x256xf32, #tpu.memory_space<vmem>>, vector<2x256xf32>
    tpu.vector_store %arg8[%c0_41, %c0_42], %50 {strides = array<i32>} : memref<2x256xf32, #tpu.memory_space<vmem>>, vector<2x256xf32>,
    return
  }
  func.func @transform_0(%arg0: i32) -> (i32, i32) {
    %c0_i32 = arith.constant 0 : i32
    %c0_i32_0 = arith.constant 0 : i32
    return %c0_i32, %arg0 : i32, i32
  }
  func.func @transform_1(%arg0: i32) -> (i32, i32) {
    %c0_i32 = arith.constant 0 : i32
    %c0_i32_0 = arith.constant 0 : i32
    %c0_i32_1 = arith.constant 0 : i32
    return %c0_i32, %c0_i32_0 : i32, i32
  }
  func.func @transform_2(%arg0: i32) -> (i32, i32) {
    %c0_i32 = arith.constant 0 : i32
    %c0_i32_0 = arith.constant 0 : i32
    %c0_i32_1 = arith.constant 0 : i32
    return %c0_i32, %c0_i32_0 : i32, i32
  }
  func.func @transform_3(%arg0: i32) -> (i32, i32, i32) {
    %c0_i32 = arith.constant 0 : i32
    %c0_i32_0 = arith.constant 0 : i32
    %c0_i32_1 = arith.constant 0 : i32
    %c0_i32_2 = arith.constant 0 : i32
    return %c0_i32, %c0_i32_0, %c0_i32_1 : i32, i32, i32
  }
  func.func @transform_4(%arg0: i32) -> (i32, i32, i32) {
    %c0_i32 = arith.constant 0 : i32
    %c0_i32_0 = arith.constant 0 : i32
    %c0_i32_1 = arith.constant 0 : i32
    %c0_i32_2 = arith.constant 0 : i32
    return %c0_i32, %c0_i32_0, %c0_i32_1 : i32, i32, i32
  }
  func.func @transform_5(%arg0: i32) -> (i32, i32) {
    %c0_i32 = arith.constant 0 : i32
    %c0_i32_0 = arith.constant 0 : i32
    %c0_i32_1 = arith.constant 0 : i32
    return %c0_i32, %c0_i32_0 : i32, i32
  }
  func.func @transform_6(%arg0: i32) -> (i32, i32) {
    %c0_i32 = arith.constant 0 : i32
    %c0_i32_0 = arith.constant 0 : i32
    %c0_i32_1 = arith.constant 0 : i32
    return %c0_i32, %c0_i32_0 : i32, i32
  }
  func.func @transform_7(%arg0: i32) -> (i32, i32) {
    %c0_i32 = arith.constant 0 : i32
    %c0_i32_0 = arith.constant 0 : i32
    return %c0_i32, %arg0 : i32, i32
  }
}

</mosaic_0001>

<bundles_post_ra>
// kernel: tpu_custom_call.1
= control target key start
LH: loop header
LB: loop body
LE: loop exit
PB: predicated region body
PF: predicated region fallthrough
CT: control target
= control target key end

     0   :  { %vm48_vm0 = vcmask 1041408   ;;  %v619_v2 = vmov 0.0   ;;  %vm44_vm1 = vcmask 15360   ;;  %v620_v5 = vmov 0   ;;  %s718_s0 = inlined_call_operand.vmem [shape: f32[2,256], index: 0, kind: input, shape index: {}]   ;;  %s719_s1 = inlined_call_operand.vmem [shape: f32[8,2], index: 1, kind: input, shape index: {}]   ;;  %s720_s2 = inlined_call_operand.vmem [shape: f32[8,1], index: 2, kind: input, shape index: {}]   ;;  %s721_s3 = inlined_call_operand.vmem [shape: f32[4,8,8], index: 3, kind: input, shape index: {}]   ;;  %s722_s4 = inlined_call_operand.vmem [shape: f32[4,8,1], index: 4, kind: input, shape index: {}]   ;;  %s723_s5 = inlined_call_operand.vmem [shape: f32[2,8], index: 5, kind: input, shape index: {}]   ;;  %s724_s6 = inlined_call_operand.vmem [shape: f32[2,1], index: 6, kind: input, shape index: {}]   ;;  %s725_s7 = inlined_call_operand.hbm [shape: f32[2,256], index: 7, kind: output, shape index: {}]  }
   0x1   :  { %v574_v0 = vld.sshfl [vmem:[%s718_s0] sm:$0x33 pattern:$0x76325410]  ;;  %117 = vmatprep.mubr.f32.mxu0 %v619_v2  ;;  %201 = vmatprep.mubr.f32.mxu1 %v619_v2 }
   0x2   :  { %v43_v1 = vcombine.high %v574_v0, %v574_v0  ;;  %v29_v3 = vld [vmem:[%s720_s2] sm:$0xff]  ;;  %593 = vset.pattern.permute.xlu0 %v620_v5  ;;  %594 = vset.pattern.permute.xlu1 %v620_v5 }
   0x3   :  { %v27_v4 = vld [vmem:[%s719_s1] sm:$0xff] }
   0x4   :  { %12 = vsyncpa [#allocation3], 0  ;;  %575 = vmatprep.subr.msk.mxu0 %vm48_vm0, %v43_v1  ;;  %32 = vperm.xlu0 %593, %v29_v3   ;;  %v127_v6 = vld [vmem:[%s722_s4] sm:$0xff]  ;;  %v586_v7 = vld [vmem:[%s722_s4 + $0x18] sm:$0xff]  ;;  %vm133_vm2 = vcmask 64512  }
   0x5   :  { %576 = vmatpush1.msk.msra.mxu0 %vm48_vm0, %v574_v0  ;;  %v126_v15 = vld [vmem:[%s721_s3] sm:$0xff]  ;;  %v580_v16 = vld [vmem:[%s722_s4 + $0x8] sm:$0xff]  ;;  %v583_v17 = vld [vmem:[%s722_s4 + $0x10] sm:$0xff] }
   0x6   :  { %577 = vmatmul.mubr.msk.f32.vlgmr.msra.gmra.mrb[0].mxu0 %vm44_vm1, %v27_v4  ;;  %216 = vperm.xlu1 %594, %v580_v16   ;;  %v466_v18 = vld [vmem:[%s724_s6] sm:$0x3]  ;;  %v579_v26 = vld [vmem:[%s721_s3 + $0x8] sm:$0xff]  ;;  %v582_v34 = vld [vmem:[%s721_s3 + $0x10] sm:$0xff] }
   0x7   :  { %286 = vmatprep.mubr.f32.mxu0 %v619_v2  ;;  %v585_v42 = vld [vmem:[%s721_s3 + $0x18] sm:$0xff]  ;;  %v465_v50 = vld [vmem:[%s723_s5] sm:$0x3]  ;;  %s621_s3 = smov [#allocation2]  }
   0x8   :  { %130 = vperm.xlu0 %593, %v127_v6   ;;  %s566_s22 = sshll.u32 %s621_s3, 4  ;;  %s567_s22 = int_to_ptr.vmem [resolvable:$true] %s566_s22 }
   0x9   :  { %s595_s23 = scalar_lea.vmem %s567_s22, 64  ;;  %p600_p1 = scmp.lt.s32.totalorder %s567_s22, %s567_s22 }
   0xa   :  { %301 = vperm.xlu1 %594, %v583_v17   ;;  %p596_p0 = scmp.ne.s32.totalorder %s567_s22, %s595_s23  ;;  %p601_p2 = scmp.lt.s32.totalorder %s595_s23, %s595_s23 }
   0xc   :  { %386 = vperm.xlu0 %593, %v586_v7   ;;  %p602_p3 = por %p601_p2, %p600_p1 }
   0xe   :  { %469 = vperm.xlu1 %594, %v466_v18   ;;  %p603_p4 = pnand %p602_p3, %p596_p0 }
  0x83   :  { %v33_v8 = vpop.permute.xlu0 %32 }
  0x85   :  { %v217_v27 = vpop.permute.xlu1 %216 }
  0x87   :  { %v131_v19 = vpop.permute.xlu0 %130 }
  0x89   :  { %v302_v35 = vpop.permute.xlu1 %301 }
  0x8b   :  { %v387_v43 = vpop.permute.xlu0 %386 }
  0x8d   :  { %v470_v51 = vpop.permute.xlu1 %469 }
  0xd9   :  { %v119_v9 = vpop.f32.mrb[0].mxu0 }
  0xda   :  { %v120_v10 = vadd.f32 %v119_v9, %v33_v8  ;;  %v121_v11 = vpop.f32.mrb[1].mxu0 }
  0xdb   :  { %v122_v12 = vadd.f32 %v121_v11, %v33_v8 }
  0xdc   :  { %v124_v14 = vmax.f32 %v120_v10, 0.0 }
  0xdd   :  { %v125_v13 = vmax.f32 %v122_v12, 0.0 }
  0xdf   :  { %137 = vmatprep.subr.mxu1 %v125_v13 }
  0xe0   :  { %138 = vmatpush1.msra.mxu1 %v124_v14 }
  0xe1   :  { %578 = vmatmul.mubr.msk.f32.vlgmr.msra.gmra.mrb[0].mxu1 %vm133_vm2, %v126_v15 }
  0xe2   :  { %371 = vmatprep.mubr.f32.mxu1 %v619_v2 }
 0x1b4   :  { %v203_v20 = vpop.f32.mrb[0].mxu1 }
 0x1b5   :  { %v204_v21 = vadd.f32 %v203_v20, %v131_v19  ;;  %v205_v22 = vpop.f32.mrb[1].mxu1 }
 0x1b6   :  { %v206_v23 = vadd.f32 %v205_v22, %v131_v19 }
 0x1b7   :  { %v208_v25 = vmax.f32 %v204_v21, 0.0 }
 0x1b8   :  { %v209_v24 = vmax.f32 %v206_v23, 0.0 }
 0x1ba   :  { %222 = vmatprep.subr.mxu0 %v209_v24 }
 0x1bb   :  { %223 = vmatpush1.msra.mxu0 %v208_v25 }
 0x1bc   :  { %581 = vmatmul.mubr.msk.f32.vlgmr.msra.gmra.mrb[2].mxu0 %vm133_vm2, %v579_v26 }
 0x1bd   :  { %456 = vmatprep.mubr.f32.mxu0 %v619_v2 }
 0x28f   :  { %v288_v28 = vpop.f32.mrb[2].mxu0 }
 0x290   :  { %v289_v29 = vadd.f32 %v288_v28, %v217_v27  ;;  %v290_v30 = vpop.f32.mrb[3].mxu0 }
 0x291   :  { %v291_v31 = vadd.f32 %v290_v30, %v217_v27 }
 0x292   :  { %v293_v33 = vmax.f32 %v289_v29, 0.0 }
 0x293   :  { %v294_v32 = vmax.f32 %v291_v31, 0.0 }
 0x295   :  { %307 = vmatprep.subr.mxu1 %v294_v32 }
 0x296   :  { %308 = vmatpush1.msra.mxu1 %v293_v33 }
 0x297   :  { %584 = vmatmul.mubr.msk.f32.vlgmr.msra.gmra.mrb[2].mxu1 %vm133_vm2, %v582_v34 }
 0x298   :  { %539 = vmatprep.mubr.f32.mxu1 %v619_v2 }
 0x36a   :  { %v373_v36 = vpop.f32.mrb[2].mxu1 }
 0x36b   :  { %v374_v37 = vadd.f32 %v373_v36, %v302_v35  ;;  %v375_v38 = vpop.f32.mrb[3].mxu1 }
 0x36c   :  { %v376_v39 = vadd.f32 %v375_v38, %v302_v35 }
 0x36d   :  { %v378_v41 = vmax.f32 %v374_v37, 0.0 }
 0x36e   :  { %v379_v40 = vmax.f32 %v376_v39, 0.0 }
 0x370   :  { %392 = vmatprep.subr.mxu0 %v379_v40 }
 0x371   :  { %393 = vmatpush1.msra.mxu0 %v378_v41 }
 0x372   :  { %587 = vmatmul.mubr.msk.f32.vlgmr.msra.gmra.mrb[4].mxu0 %vm133_vm2, %v585_v42 }
 0x445   :  { %v458_v44 = vpop.f32.mrb[4].mxu0 }
 0x446   :  { %v459_v45 = vadd.f32 %v458_v44, %v387_v43  ;;  %v460_v46 = vpop.f32.mrb[5].mxu0 }
 0x447   :  { %v461_v47 = vadd.f32 %v460_v46, %v387_v43 }
 0x448   :  { %v463_v49 = vmax.f32 %v459_v45, 0.0 }
 0x449   :  { %v464_v48 = vmax.f32 %v461_v47, 0.0 }
 0x44b   :  { %475 = vmatprep.subr.mxu1 %v464_v48 }
 0x44c   :  { %476 = vmatpush1.msra.mxu1 %v463_v49 }
 0x44d   :  { %588 = vmatmul.mubr.msk.f32.vlgmr.msra.gmra.mrb[4].mxu1 %vm133_vm2, %v465_v50 }
 0x520   :  { %v541_v52 = vpop.f32.mrb[4].mxu1 }
 0x521   :  { %v542_v53 = vadd.f32 %v541_v52, %v470_v51  ;;  %v543_v54 = vpop.f32.mrb[5].mxu1 }
 0x522   :  { %v544_v55 = vadd.f32 %v543_v54, %v470_v51 }
 0x523   :  { %v546_v56 = vmax.f32 %v542_v53, 0.0 }
 0x524   :  { %v547_v57 = vmax.f32 %v544_v55, 0.0 }
 0x526   :  { %v550_v58 = vcombine.low %v546_v56, %v547_v57 }
 0x528   :  { %589 = vst.sshfl [vmem:[#allocation2] sm:$0x33 pattern:$0x76325410] %v550_v58 }
 0x529   :  { %606 = shalt.err (!%p603_p4)
}
 0x52a   :  { %s607_s25 = scalar_lea.hbm %s725_s7, 64 }
 0x52b   :  { %p608_p5 = scmp.ne.s32.totalorder %s725_s7, %s607_s25  ;;  %p611_p6 = scmp.lt.u32.totalorder %s607_s25, %s725_s7 }
 0x52d   :  { %p613_p7 = pnand %p611_p6, %p608_p5 }
 0x52f   :  { %616 = shalt.err (!%p613_p7)
}
 0x530   :  { %569 = dma.vmem_to_hbm [thread:$0]  %s567_s22, 64, %s725_s7, [#allocation3]  }
 0x531   :  { %617 = dma.done.wait [#allocation3], 64  }
 0x532   :  { %618 = vsyncadd [#allocation3], 4294967232 }
 0x533   :  { %573 = vsyncpa [#allocation3], 1 }

</bundles_post_ra>
